<compile_context>
chip_gen: v6e
topology: v6e:2x2x1
jax: 0.10.0
libtpu: 0.0.40
codegen_flags: <defaults>
</compile_context>

<pallas_src>
import types
import numpy as np
import jax
import jax.numpy as jnp
from jax import lax
from jax.experimental import pallas as pl
from jax.experimental.pallas import tpu as pltpu


_VMEM_LIMIT_BYTES = 32 * 1024 * 1024      # safe scoped limit on v5e/v6e/v7x
_DEFAULT_TILE_BYTES = 2 * 1024 * 1024     # target bytes per hidden-state block


# ---------------------------------------------------------------------------
# Tile selection
# ---------------------------------------------------------------------------
def _cls_batch_tile(B):
    # CLS output block is 2-D (tB, H): tB must be a multiple of 8 or full B.
    return B if B <= 8 else 8


def _pick_avg_tiles(B, S, H, itemsize, target_bytes):
    """Pick (tB, tS) for the masked-average kernels.

    Constraints:
      * mask block (tB, 1, tS): tS must be a multiple of 128 or == S.
      * hidden block (tB, tS, H): tS must be a multiple of 8 or == S; H full.
      * tS must divide S exactly (reduction axis -> no garbage partial blocks).
    """
    tB = B if B <= 8 else 8
    if S <= 128 or (S % 128) != 0:
        tS = S                                  # full extent: always legal
    else:
        tS = 128
        t = 256
        while t <= S:
            if (S % t) == 0 and tB * t * H * itemsize <= target_bytes:
                tS = t
            t += 128
    # Very large H: shrink the batch tile so one block stays near the budget.
    while tB > 1 and tB * tS * H * itemsize > 2 * target_bytes:
        tB = max(1, tB // 2)
    return tB, tS


# ---------------------------------------------------------------------------
# Kernels
# ---------------------------------------------------------------------------
def _cls_kernel(last_ref, out_ref):
    # last_ref: [tB, tS0, H] -- only the leading tokens were DMA'd; token 0 = CLS.
    out_ref[...] = last_ref[:, 0, :]


def _masked_seq_sum(mask3, h):
    """num[b, 0, :] = sum_s mask3[b, 0, s] * h[b, s, :]   (MXU, f32 accumulate)."""
    prec = lax.Precision.HIGHEST if h.dtype == jnp.float32 else lax.Precision.DEFAULT
    return jnp.einsum("bqs,bsh->bqh", mask3.astype(h.dtype), h,
                      preferred_element_type=jnp.float32, precision=prec)


def _avg_kernel(mask_ref, h_ref, out_ref, num_ref, den_ref):
    s = pl.program_id(1)

    @pl.when(s == 0)
    def _init():
        num_ref[...] = jnp.zeros_like(num_ref)
        den_ref[...] = jnp.zeros_like(den_ref)

    mask3 = mask_ref[...]                                        # [tB, 1, tS]
    num_ref[...] += _masked_seq_sum(mask3, h_ref[...])           # [tB, 1, H]
    den_ref[...] += jnp.sum(mask3.astype(jnp.float32), axis=2, keepdims=True)

    @pl.when(s == pl.num_programs(1) - 1)
    def _finalize():
        # NOTE: a fully-masked row (den == 0) yields inf/nan, same as the torch ref.
        out_ref[...] = (num_ref[...] / den_ref[...]).astype(out_ref.dtype)


def _avg_two_kernel(mask_ref, h1_ref, h2_ref, out_ref, num_ref, den_ref):
    s = pl.program_id(1)

    @pl.when(s == 0)
    def _init():
        num_ref[...] = jnp.zeros_like(num_ref)
        den_ref[...] = jnp.zeros_like(den_ref)

    mask3 = mask_ref[...]                                        # [tB, 1, tS]
    num_ref[...] += (_masked_seq_sum(mask3, h1_ref[...]) +
                     _masked_seq_sum(mask3, h2_ref[...]))
    den_ref[...] += jnp.sum(mask3.astype(jnp.float32), axis=2, keepdims=True)

    @pl.when(s == pl.num_programs(1) - 1)
    def _finalize():
        # (h1 + h2) / 2 folded into the epilogue: 0.5 * num / den.
        out_ref[...] = (0.5 * num_ref[...] / den_ref[...]).astype(out_ref.dtype)


# ---------------------------------------------------------------------------
# pallas_call wrappers
# ---------------------------------------------------------------------------
def cls_pool(last_hidden):
    B, S, H = last_hidden.shape
    tB = _cls_batch_tile(B)
    tS0 = S if S < 8 else 8                 # fetch only the leading tokens, not all S
    return pl.pallas_call(
        _cls_kernel,
        out_shape=jax.ShapeDtypeStruct((B, H), last_hidden.dtype),
        grid_spec=pltpu.PrefetchScalarGridSpec(
            num_scalar_prefetch=0,
            grid=(pl.cdiv(B, tB),),
            in_specs=[pl.BlockSpec((tB, tS0, H), lambda b: (b, 0, 0))],
            out_specs=pl.BlockSpec((tB, H), lambda b: (b, 0))),
        compiler_params=pltpu.CompilerParams(
            dimension_semantics=("parallel",),
            vmem_limit_bytes=_VMEM_LIMIT_BYTES),
    )(last_hidden)


def _masked_avg_pool(kernel, attention_mask, hiddens, tile_bytes):
    B, S, H = hiddens[0].shape
    itemsize = jnp.dtype(hiddens[0].dtype).itemsize
    tB, tS = _pick_avg_tiles(B, S, H, itemsize, tile_bytes)
    grid = (pl.cdiv(B, tB), S // tS)        # B parallel, S (reduction) last

    mask3 = attention_mask[:, None, :]      # [B, 1, S]; free reshape outside kernel
    h_spec = pl.BlockSpec((tB, tS, H), lambda b, s: (b, s, 0))

    out = pl.pallas_call(
        kernel,
        out_shape=jax.ShapeDtypeStruct((B, 1, H), jnp.float32),
        grid_spec=pltpu.PrefetchScalarGridSpec(
            num_scalar_prefetch=0,
            grid=grid,
            in_specs=[pl.BlockSpec((tB, 1, tS), lambda b, s: (b, 0, s))]
                     + [h_spec] * len(hiddens),
            out_specs=pl.BlockSpec((tB, 1, H), lambda b, s: (b, 0, 0)),
            scratch_shapes=[pltpu.VMEM((tB, 1, H), jnp.float32),   # num accumulator
                            pltpu.VMEM((tB, 1, 1), jnp.float32)]), # den accumulator
        compiler_params=pltpu.CompilerParams(
            dimension_semantics=("parallel", "arbitrary"),
            vmem_limit_bytes=_VMEM_LIMIT_BYTES),
    )(mask3, *hiddens)
    return out[:, 0, :]


def avg_pool(attention_mask, last_hidden, tile_bytes=_DEFAULT_TILE_BYTES):
    return _masked_avg_pool(_avg_kernel, attention_mask, (last_hidden,), tile_bytes)


def avg_two_pool(attention_mask, hidden_a, hidden_b, tile_bytes=_DEFAULT_TILE_BYTES):
    return _masked_avg_pool(_avg_two_kernel, attention_mask,
                            (hidden_a, hidden_b), tile_bytes)


# ---------------------------------------------------------------------------
# Pooler module equivalent
# ---------------------------------------------------------------------------
class Pooler:
    """Parameter-free pooler; Pallas-backed forward."""

    def __init__(self, pooler_type, tile_bytes=_DEFAULT_TILE_BYTES):
        assert pooler_type in ['cls', 'cls_before_pooler', 'avg',
                               'avg_top2', 'avg_first_last'], \
            'unrecognized pooling type %s' % pooler_type
        self.pooler_type = pooler_type
        self.tile_bytes = tile_bytes

    def __call__(self, attention_mask, outputs):
        last_hidden = outputs.last_hidden_state
        hidden_states = outputs.hidden_states
        if self.pooler_type in ('cls_before_pooler', 'cls'):
            return cls_pool(last_hidden)
        elif self.pooler_type == 'avg':
            return avg_pool(attention_mask, last_hidden, self.tile_bytes)
        elif self.pooler_type == 'avg_first_last':
            return avg_two_pool(attention_mask, hidden_states[1],
                                hidden_states[-1], self.tile_bytes)
        elif self.pooler_type == 'avg_top2':
            return avg_two_pool(attention_mask, hidden_states[-2],
                                hidden_states[-1], self.tile_bytes)
        else:
            raise NotImplementedError


# ---------------------------------------------------------------------------
# Pure-JAX reference for verification
# ---------------------------------------------------------------------------
def _ref_pool(pooler_type, attention_mask, outputs):
    last_hidden = outputs.last_hidden_state
    hs = outputs.hidden_states
    m = attention_mask.astype(jnp.float32)
    if pooler_type in ('cls', 'cls_before_pooler'):
        return last_hidden[:, 0]
    if pooler_type == 'avg':
        return (last_hidden * m[:, :, None]).sum(1) / m.sum(-1)[:, None]
    if pooler_type == 'avg_first_last':
        h = (hs[1] + hs[-1]) / 2.0
        return (h * m[:, :, None]).sum(1) / m.sum(-1)[:, None]
    if pooler_type == 'avg_top2':
        h = (hs[-2] + hs[-1]) / 2.0
        return (h * m[:, :, None]).sum(1) / m.sum(-1)[:, None]
    raise NotImplementedError


# ---------------------------------------------------------------------------
# Test harness
# ---------------------------------------------------------------------------
def _make_outputs(key, B, S, H, n_layers, dtype):
    keys = jax.random.split(key, n_layers + 2)
    hidden_states = tuple(
        jax.random.normal(keys[i], (B, S, H), dtype=jnp.float32).astype(dtype)
        for i in range(n_layers + 1))
    last_hidden = hidden_states[-1]
    pooler_output = jax.random.normal(keys[-1], (B, H), dtype=jnp.float32).astype(dtype)
    return types.SimpleNamespace(last_hidden_state=last_hidden,
                                 pooler_output=pooler_output,
                                 hidden_states=hidden_states)


def _make_mask(key, B, S):
    lens = jax.random.randint(key, (B,), minval=1, maxval=S + 1)
    pos = jnp.arange(S)[None, :]
    return (pos < lens[:, None]).astype(jnp.float32)


if __name__ == "__main__":
    POOLER_TYPES = ['cls', 'cls_before_pooler', 'avg', 'avg_top2', 'avg_first_last']

    configs = [
        # (name,        B,  S,   H,  n_layers, dtype,        tile_bytes,          rtol, atol)
        ("tiny-f32",    2,  8,   32, 3,        jnp.float32,  _DEFAULT_TILE_BYTES, 1e-4, 1e-5),
        ("tiled-f32",   16, 256, 128, 2,       jnp.float32,  256 * 1024,          1e-4, 1e-5),
        ("tiled-bf16",  16, 256, 128, 2,       jnp.bfloat16, 256 * 1024,          1e-2, 1e-2),
    ]

    root = jax.random.PRNGKey(0)
    for idx, (name, B, S, H, n_layers, dtype, tile_bytes, rtol, atol) in enumerate(configs):
        kd, km = jax.random.split(jax.random.fold_in(root, idx))
        outputs = _make_outputs(kd, B, S, H, n_layers, dtype)
        attention_mask = _make_mask(km, B, S)

        for ptype in POOLER_TYPES:
            pooler = Pooler(ptype, tile_bytes=tile_bytes)
            got = jax.block_until_ready(pooler(attention_mask, outputs))
            want = _ref_pool(ptype, attention_mask, outputs)
            got_f = np.asarray(jnp.asarray(got, jnp.float32))
            want_f = np.asarray(jnp.asarray(want, jnp.float32))
            np.testing.assert_allclose(got_f, want_f, rtol=rtol, atol=atol,
                                       err_msg=f"{name}:{ptype}")
            assert got.shape == (B, H), (name, ptype, got.shape)

    print("KERNEL_OK")
</pallas_src>

<mosaic_0001>
module attributes {stable_mosaic.version = 11 : i64} {
  func.func @_cls_kernel(%arg0: i32, %arg1: memref<2x8x32xf32, #tpu.memory_space<vmem>>, %arg2: memref<2x32xf32, #tpu.memory_space<vmem>>) attributes {dimension_semantics = [#tpu.dimension_semantics<parallel>], iteration_bounds = array<i64: 1>, scalar_prefetch = 0 : i64, scratch_operands = 0 : i64, tpu.core_type = #tpu.core_type<tc>, window_params = [{transform_indices = @transform_0, window_bounds = array<i64: 2, 8, 32>}, {transform_indices = @transform_1, window_bounds = array<i64: 2, 32>}]} {
    %c0 = arith.constant 0 : index
    %c0_0 = arith.constant 0 : index
    %c0_1 = arith.constant 0 : index
    %0 = vector.load %arg1[%c0, %c0_0, %c0_1] : memref<2x8x32xf32, #tpu.memory_space<vmem>>, vector<2x1x32xf32>
    %1 = vector.shape_cast %0 : vector<2x1x32xf32> to vector<2x32xf32>
    %c0_2 = arith.constant 0 : index
    %c0_3 = arith.constant 0 : index
    %2 = vector.load %arg2[%c0_2, %c0_3] : memref<2x32xf32, #tpu.memory_space<vmem>>, vector<2x32xf32>
    tpu.vector_store %arg2[%c0_2, %c0_3], %1 {strides = array<i32>} : memref<2x32xf32, #tpu.memory_space<vmem>>, vector<2x32xf32>,
    return
  }
  func.func @transform_0(%arg0: i32) -> (i32, i32, i32) {
    %c0_i32 = arith.constant 0 : i32
    %c0_i32_0 = arith.constant 0 : i32
    %c0_i32_1 = arith.constant 0 : i32
    return %arg0, %c0_i32, %c0_i32_0 : i32, i32, i32
  }
  func.func @transform_1(%arg0: i32) -> (i32, i32) {
    %c0_i32 = arith.constant 0 : i32
    %c0_i32_0 = arith.constant 0 : i32
    return %arg0, %c0_i32 : i32, i32
  }
}

</mosaic_0001>

<bundles_post_ra>
// kernel: tpu_custom_call.1
= control target key start
LH: loop header
LB: loop body
LE: loop exit
PB: predicated region body
PF: predicated region fallthrough
CT: control target
= control target key end

     0   :  { %6 = vsyncpa [#allocation3], 0  ;;  %s116_s0 = inlined_call_operand.hbm [shape: f32[2,8,32], index: 0, kind: input, shape index: {}]   ;;  %s117_s1 = inlined_call_operand.hbm [shape: f32[2,32], index: 1, kind: output, shape index: {}]  }
   0x1   :  { %7 = vsyncpa [#allocation4], 0  ;;  %s96_s6 = smov [#allocation2]  }
   0x2   :  { %s13_s7 = sshll.u32 %s96_s6, 4  ;;  %s14_s7 = int_to_ptr.vmem [resolvable:$true] %s13_s7 }
   0x3   :  { %s60_s8 = scalar_lea.vmem %s14_s7, 256  ;;  %p65_p1 = scmp.lt.s32.totalorder %s14_s7, %s14_s7 }
   0x4   :  { %p61_p0 = scmp.ne.s32.totalorder %s14_s7, %s60_s8  ;;  %p66_p2 = scmp.lt.s32.totalorder %s60_s8, %s60_s8 }
   0x6   :  { %p67_p3 = por %p66_p2, %p65_p1 }
   0x8   :  { %p68_p4 = pnand %p67_p3, %p61_p0 }
   0xa   :  { %71 = shalt.err (!%p68_p4)
}
   0xb   :  { %s97_s9 = smov 128   ;;  %s98_s10 = smov 8  }
   0xc   :  { %19 = dma.hbm_to_vmem [thread:$0]  %s116_s0, 256, %s14_s7, [#allocation3], %s97_s9, %s97_s9, %s98_s10  }
   0xd   :  { %92 = dma.done.wait [#allocation3], 256  }
   0xe   :  { %93 = vsyncadd [#allocation3], 4294967040  ;;  %s99_s13 = smov [#allocation5]   ;;  %v23_v0 = vld [vmem:[#allocation2] sm:$0x1]  ;;  %vm28_vm0 = vcmask 1041409  }
   0xf   :  { %s39_s14 = sshll.u32 %s99_s13, 4  ;;  %v24_v1 = vld [vmem:[#allocation2 + $0x8] sm:$0x1]  ;;  %vm31_vm1 = vcmask 254976   ;;  %s40_s14 = int_to_ptr.vmem [resolvable:$true] %s39_s14 }
  0x10   :  { %v27_v2 = vrot.slane %v24_v1, 7  ;;  %s72_s15 = scalar_lea.vmem %s40_s14, 32  ;;  %p77_p6 = scmp.lt.s32.totalorder %s40_s14, %s40_s14 }
  0x11   :  { %p73_p5 = scmp.ne.s32.totalorder %s40_s14, %s72_s15  ;;  %p78_p7 = scmp.lt.s32.totalorder %s72_s15, %s72_s15 }
  0x12   :  { %v29_v3 = vsel %vm28_vm0, %v27_v2, %v23_v0 }
  0x13   :  { %32 = vst.msk [vmem:[#allocation5] sm:$0x3] %vm31_vm1, %v29_v3  ;;  %p79_p8 = por %p78_p7, %p77_p6 }
  0x15   :  { %p80_p9 = pnand %p79_p8, %p73_p5 }
  0x17   :  { %83 = shalt.err (!%p80_p9)
}
  0x18   :  { %42 = dma.vmem_to_hbm [thread:$0]  %s40_s14, 32, %s117_s1, [#allocation4]  }
  0x19   :  { %94 = dma.done.wait [#allocation4], 32  }
  0x1a   :  { %95 = vsyncadd [#allocation4], 4294967264 }
  0x1b   :  { %46 = vsyncpa [#allocation3], 1 }
  0x1c   :  { %47 = vsyncpa [#allocation4], 1 }

</bundles_post_ra>
